<compile_context>
chip_gen: v7x
topology: tpu7x:2x2x1
jax: 0.10.0
libtpu: 0.0.40
codegen_flags: <defaults>
</compile_context>

<pallas_src>
import jax
import jax.numpy as jnp
import numpy as np
from jax.experimental import pallas as pl
from jax.experimental.pallas import tpu as pltpu


# --------------------------------------------------------------------------
# Kernel A: fused preprocess
#   sem[b, :nc] = one-hot(label[b])        sem[b, nc] = edge(instance[b])
#   occ[c]     += #pixels of class c       (accumulated over the batch grid)
# --------------------------------------------------------------------------
def _preprocess_kernel(lbl_ref, inst_ref, sem_ref, occ_ref):
    nc = occ_ref.shape[0]
    lbl = lbl_ref[0]                                   # (1, H, W) int32
    _, hh, ww = lbl.shape

    # ---- one-hot label scatter over the channel axis -----------------------
    c_iota = jax.lax.broadcasted_iota(jnp.int32, (nc, hh, ww), 0)
    onehot = (c_iota == lbl).astype(jnp.float32)       # (nc, H, W)

    # ---- class-occurrence histogram (no extra HBM pass: one-hot is in VMEM) -
    @pl.when(pl.program_id(0) == 0)
    def _():
        occ_ref[...] = jnp.zeros_like(occ_ref)
    # two lane-axis reductions: (nc,H,W) -> (nc,H) -> (nc,1)
    occ_ref[...] += jnp.sum(jnp.sum(onehot, axis=2), axis=1, keepdims=True)

    # ---- instance edge map (get_edges) --------------------------------------
    # NOTE: slice+concat shifts are kept (instead of pltpu.roll) because the lane
    # dimension here is W, which at small/test shapes is not 128-aligned; the edge
    # op is a negligible fraction of the kernel's HBM traffic (it is bandwidth-bound
    # on the (nc+1)-channel output write, not on these VPU/relayout ops).
    t = inst_ref[0, 0]                                 # (H, W) int32
    zc = jnp.zeros((hh, 1), jnp.int32)
    zr = jnp.zeros((1, ww), jnp.int32)
    dw = (t[:, 1:] != t[:, :-1]).astype(jnp.int32)     # (H, W-1)
    dh = (t[1:, :] != t[:-1, :]).astype(jnp.int32)     # (H-1, W)
    ew = jnp.concatenate([zc, dw], axis=1) | jnp.concatenate([dw, zc], axis=1)
    eh = jnp.concatenate([zr, dh], axis=0) | jnp.concatenate([dh, zr], axis=0)
    edge = ((ew | eh) > 0).astype(jnp.float32)         # (H, W)

    # ---- single store of the concatenated [one-hot ++ edge] block ----------
    sem_ref[0] = jnp.concatenate([onehot, edge[None]], axis=0)


def preprocess_semantics_pallas(label_map, inst_map, nc):
    """label_map, inst_map: (B,1,H,W) int32 ->
         sem: (B, nc+1, H, W) float32   (one-hot channels ++ instance edge channel)
         occ: (nc, 1)        float32    (per-class pixel counts over the whole batch)
    """
    b, _, h, w = label_map.shape
    # One full image per grid step.  For production-size images with large nc,
    # tile over H (with a 1-row halo for the vertical edge diff) to respect the
    # 32 MiB default scoped VMEM on v7x; at these shapes a whole image fits easily.
    sem, occ = pl.pallas_call(
        _preprocess_kernel,
        out_shape=(jax.ShapeDtypeStruct((b, nc + 1, h, w), jnp.float32),
                   jax.ShapeDtypeStruct((nc, 1), jnp.float32)),
        grid_spec=pltpu.PrefetchScalarGridSpec(
            num_scalar_prefetch=0,
            grid=(b,),
            in_specs=[pl.BlockSpec((1, 1, h, w), lambda i: (i, 0, 0, 0)),
                      pl.BlockSpec((1, 1, h, w), lambda i: (i, 0, 0, 0))],
            out_specs=[pl.BlockSpec((1, nc + 1, h, w), lambda i: (i, 0, 0, 0)),
                       pl.BlockSpec((nc, 1), lambda i: (0, 0))],
        ),
        # occ is a cross-batch accumulator -> the batch axis must stay sequential.
        compiler_params=pltpu.CompilerParams(dimension_semantics=("arbitrary",)),
    )(label_map, inst_map)
    return sem, occ


# --------------------------------------------------------------------------
# Kernel B: balance_label weight map  ==  coefficients[label]  (gather)
#   coeff lives in SMEM (tiny per-class table); only the int32 labels are read.
# --------------------------------------------------------------------------
def _weight_map_kernel(lbl_ref, coeff_ref, w_ref):
    lbl = lbl_ref[0]                                   # (1, H, W) int32
    nc = coeff_ref.shape[0]
    out = jnp.zeros(lbl.shape, jnp.float32)
    # static unrolled select-chain gather; uses SMEM scalar reads (select, not
    # multiply-by-mask, so absent-class coefficients can never contaminate it).
    for c in range(nc):
        out = jnp.where(lbl == c, coeff_ref[c], out)
    w_ref[0] = out


def weight_map_pallas(label_map, coeff):
    """label_map: (B,1,H,W) int32, coeff: (nc,) float32 -> (B,1,H,W) float32."""
    b, _, h, w = label_map.shape
    return pl.pallas_call(
        _weight_map_kernel,
        out_shape=jax.ShapeDtypeStruct((b, 1, h, w), jnp.float32),
        grid_spec=pltpu.PrefetchScalarGridSpec(
            num_scalar_prefetch=0,
            grid=(b,),
            in_specs=[pl.BlockSpec((1, 1, h, w), lambda i: (i, 0, 0, 0)),
                      pl.BlockSpec(memory_space=pltpu.MemorySpace.SMEM)],
            out_specs=pl.BlockSpec((1, 1, h, w), lambda i: (i, 0, 0, 0)),
        ),
        compiler_params=pltpu.CompilerParams(dimension_semantics=("parallel",)),
    )(label_map, coeff)


# --------------------------------------------------------------------------
# Module wrapper (the implementable data path of Pix2PixModel)
# --------------------------------------------------------------------------
class Pix2PixModelPallas:
    def __init__(self, label_nc=7, contain_dontcare_label=True,
                 no_instance=False, segloss=True):
        self.nc = label_nc + 1 if contain_dontcare_label else label_nc
        self.no_instance = no_instance
        self.segloss = segloss
        self.input_semantics = None
        self.loss_coff = None

    def preprocess_input(self, data):
        label_map = data["class_label"].astype(jnp.int32)          # (B,1,H,W)
        inst_map = data["instance"].astype(jnp.int32)               # (B,1,H,W)
        b, _, h, w = label_map.shape

        # fused: one-hot scatter + instance edge channel + class histogram,
        # written directly into the concatenated buffer (no wrapper concat/transpose).
        sem_full, occ = preprocess_semantics_pallas(label_map, inst_map, self.nc)
        self.input_semantics = sem_full[:, :self.nc]
        input_semantics = self.input_semantics if self.no_instance else sem_full

        if self.segloss:
            # balance_label: coefficients from the label histogram, then a
            # per-pixel coeff[label] gather (== coefficients[argmax(one_hot, dim=1)]).
            k = jnp.sum(occ > 0).astype(jnp.float32)                 # num_of_classes
            numel = float(b * self.nc * h * w)                       # numel(one-hot)
            coeff = jnp.where(occ > 0, numel / (occ * k * self.nc), 0.0)
            coeff = coeff.reshape(-1).astype(jnp.float32)            # (nc,)
            self.loss_coff = weight_map_pallas(label_map, coeff)
        return input_semantics, data["image"]

    def forward(self, data, mode="preprocess"):
        input_semantics, real_image = self.preprocess_input(data)
        # TODO(synk): 'generator'/'discriminator'/'encode_only'/'inference' modes require
        # netG/netD/netE, SegNet, GANLoss, VGGLoss from the external `networks` package
        # plus pretrained checkpoints; only the preprocessing / loss-weight data path is
        # implemented as Pallas kernels.
        return input_semantics, real_image, self.loss_coff


# --------------------------------------------------------------------------
# Pure-JAX/numpy references (for correctness checks)
# --------------------------------------------------------------------------
def onehot_ref(label_map, nc):
    oh = jax.nn.one_hot(label_map[:, 0], nc, dtype=jnp.float32)      # (B,H,W,C)
    return jnp.transpose(oh, (0, 3, 1, 2))


def get_edges_ref(t):
    t = np.asarray(t)
    e = np.zeros(t.shape, dtype=bool)
    dw = t[:, :, :, 1:] != t[:, :, :, :-1]
    e[:, :, :, 1:] |= dw
    e[:, :, :, :-1] |= dw
    dh = t[:, :, 1:, :] != t[:, :, :-1, :]
    e[:, :, 1:, :] |= dh
    e[:, :, :-1, :] |= dh
    return e.astype(np.float32)


def balance_label_ref(label):
    occ = jnp.sum(label, axis=(0, 2, 3))
    k = jnp.sum(occ > 0)
    coeff = (1.0 / occ) * label.size / (k * label.shape[1])
    integers = jnp.argmax(label, axis=1, keepdims=True)
    return coeff[integers]


if __name__ == "__main__":
    B, LABEL_NC, H, W = 2, 7, 16, 16        # nc = label_nc + 1 (contain_dontcare_label)
    key = jax.random.PRNGKey(0)
    k1, k2, k3, k4, k5 = jax.random.split(key, 5)

    data = {
        "class_label": jax.random.randint(k1, (B, 1, H, W), 0, LABEL_NC + 1, dtype=jnp.int32),
        "instance": jax.random.randint(k2, (B, 1, H, W), 0, 4, dtype=jnp.int32),
        "image": jax.random.normal(k3, (B, 3, H, W), dtype=jnp.float32),
        "retrieval_image": jax.random.normal(k4, (B, 3, H, W), dtype=jnp.float32),
        "modified_image": jax.random.normal(k5, (B, 3, H, W), dtype=jnp.float32),
    }

    model = Pix2PixModelPallas(label_nc=LABEL_NC, contain_dontcare_label=True,
                               no_instance=False, segloss=True)
    input_semantics, real_image, loss_coff = model.forward(data)
    jax.block_until_ready((input_semantics, real_image, loss_coff))

    # correctness checks against pure JAX/numpy references
    oh_ref = onehot_ref(data["class_label"], model.nc)
    np.testing.assert_allclose(np.asarray(input_semantics[:, :model.nc]),
                               np.asarray(oh_ref), rtol=1e-6, atol=1e-6)
    np.testing.assert_allclose(np.asarray(model.input_semantics),
                               np.asarray(oh_ref), rtol=1e-6, atol=1e-6)

    edges_ref = get_edges_ref(data["instance"])
    np.testing.assert_allclose(np.asarray(input_semantics[:, model.nc:]), edges_ref,
                               rtol=1e-6, atol=1e-6)

    coff_ref = balance_label_ref(oh_ref)
    np.testing.assert_allclose(np.asarray(loss_coff), np.asarray(coff_ref),
                               rtol=1e-5, atol=1e-6)

    assert input_semantics.shape == (B, model.nc + 1, H, W)
    assert loss_coff.shape == (B, 1, H, W)

    print("KERNEL_OK")
</pallas_src>

<mosaic_0001>
module attributes {stable_mosaic.version = 11 : i64} {
  func.func @_preprocess_kernel(%arg0: i32, %arg1: memref<1x1x16x16xi32, #tpu.memory_space<vmem>>, %arg2: memref<1x1x16x16xi32, #tpu.memory_space<vmem>>, %arg3: memref<1x9x16x16xf32, #tpu.memory_space<vmem>>, %arg4: memref<8x1xf32, #tpu.memory_space<vmem>>) attributes {dimension_semantics = [#tpu.dimension_semantics<arbitrary>], iteration_bounds = array<i64: 2>, scalar_prefetch = 0 : i64, scratch_operands = 0 : i64, tpu.core_type = #tpu.core_type<tc>, window_params = [{transform_indices = @transform_0, window_bounds = array<i64: 1, 1, 16, 16>}, {transform_indices = @transform_1, window_bounds = array<i64: 1, 1, 16, 16>}, {transform_indices = @transform_2, window_bounds = array<i64: 1, 9, 16, 16>}, {pipeline_mode = #tpu.pipeline_mode<synchronous>, transform_indices = @transform_3, window_bounds = array<i64: 8, 1>}]} {
    %c0 = arith.constant 0 : index
    %c0_0 = arith.constant 0 : index
    %c0_1 = arith.constant 0 : index
    %c0_2 = arith.constant 0 : index
    %0 = vector.load %arg1[%c0, %c0_0, %c0_1, %c0_2] : memref<1x1x16x16xi32, #tpu.memory_space<vmem>>, vector<1x1x16x16xi32>
    %1 = vector.shape_cast %0 : vector<1x1x16x16xi32> to vector<1x16x16xi32>
    %2 = tpu.iota {dimensions = array<i32: 0>} : vector<8x16x16xi32>
    %3 = vector.broadcast %1 : vector<1x16x16xi32> to vector<8x16x16xi32>
    %4 = arith.cmpi eq, %2, %3 : vector<8x16x16xi32>
    %5 = arith.extui %4 : vector<8x16x16xi1> to vector<8x16x16xi32>
    %6 = arith.sitofp %5 : vector<8x16x16xi32> to vector<8x16x16xf32>
    %c0_i32 = arith.constant 0 : i32
    %7 = arith.cmpi eq, %arg0, %c0_i32 : i32
    %8 = arith.extui %7 : i1 to i32
    %c0_i32_3 = arith.constant 0 : i32
    %9 = arith.cmpi ne, %8, %c0_i32_3 : i32
    scf.if %9 {
      %cst_20 = arith.constant 0.000000e+00 : f32
      %44 = vector.broadcast %cst_20 : f32 to vector<8x1xf32>
      %c0_21 = arith.constant 0 : index
      %c0_22 = arith.constant 0 : index
      %45 = vector.load %arg4[%c0_21, %c0_22] : memref<8x1xf32, #tpu.memory_space<vmem>>, vector<8x1xf32>
      tpu.vector_store %arg4[%c0_21, %c0_22], %44 {strides = array<i32>} : memref<8x1xf32, #tpu.memory_space<vmem>>, vector<8x1xf32>,
    } else {
    }
    %c0_4 = arith.constant 0 : index
    %c0_5 = arith.constant 0 : index
    %10 = vector.load %arg4[%c0_4, %c0_5] : memref<8x1xf32, #tpu.memory_space<vmem>>, vector<8x1xf32>
    %cst = arith.constant dense<0.000000e+00> : vector<8x16xf32>
    %11 = vector.multi_reduction <add>, %6, %cst [2] : vector<8x16x16xf32> to vector<8x16xf32>
    %cst_6 = arith.constant dense<0.000000e+00> : vector<8xf32>
    %12 = vector.multi_reduction <add>, %11, %cst_6 [1] : vector<8x16xf32> to vector<8xf32>
    %13 = vector.shape_cast %12 : vector<8xf32> to vector<8x1xf32>
    %14 = arith.addf %10, %13 : vector<8x1xf32>
    %c0_7 = arith.constant 0 : index
    %c0_8 = arith.constant 0 : index
    %15 = vector.load %arg4[%c0_7, %c0_8] : memref<8x1xf32, #tpu.memory_space<vmem>>, vector<8x1xf32>
    tpu.vector_store %arg4[%c0_7, %c0_8], %14 {strides = array<i32>} : memref<8x1xf32, #tpu.memory_space<vmem>>, vector<8x1xf32>,
    %c0_9 = arith.constant 0 : index
    %c0_10 = arith.constant 0 : index
    %c0_11 = arith.constant 0 : index
    %c0_12 = arith.constant 0 : index
    %16 = vector.load %arg2[%c0_9, %c0_10, %c0_11, %c0_12] : memref<1x1x16x16xi32, #tpu.memory_space<vmem>>, vector<1x1x16x16xi32>
    %17 = vector.shape_cast %16 : vector<1x1x16x16xi32> to vector<16x16xi32>
    %c0_i32_13 = arith.constant 0 : i32
    %18 = vector.broadcast %c0_i32_13 : i32 to vector<16x1xi32>
    %c0_i32_14 = arith.constant 0 : i32
    %19 = vector.broadcast %c0_i32_14 : i32 to vector<1x16xi32>
    %20 = vector.extract_strided_slice %17 {offsets = [0, 1], sizes = [16, 15], strides = [1, 1]} : vector<16x16xi32> to vector<16x15xi32>
    %21 = vector.extract_strided_slice %17 {offsets = [0, 0], sizes = [16, 15], strides = [1, 1]} : vector<16x16xi32> to vector<16x15xi32>
    %22 = arith.cmpi ne, %20, %21 : vector<16x15xi32>
    %23 = arith.extui %22 : vector<16x15xi1> to vector<16x15xi32>
    %24 = vector.extract_strided_slice %17 {offsets = [1, 0], sizes = [15, 16], strides = [1, 1]} : vector<16x16xi32> to vector<15x16xi32>
    %25 = vector.extract_strided_slice %17 {offsets = [0, 0], sizes = [15, 16], strides = [1, 1]} : vector<16x16xi32> to vector<15x16xi32>
    %26 = arith.cmpi ne, %24, %25 : vector<15x16xi32>
    %27 = arith.extui %26 : vector<15x16xi1> to vector<15x16xi32>
    %28 = tpu.concatenate %18, %23 in 1 : vector<16x1xi32>, vector<16x15xi32> -> vector<16x16xi32>
    %29 = tpu.concatenate %23, %18 in 1 : vector<16x15xi32>, vector<16x1xi32> -> vector<16x16xi32>
    %30 = arith.ori %28, %29 : vector<16x16xi32>
    %31 = tpu.concatenate %19, %27 in 0 : vector<1x16xi32>, vector<15x16xi32> -> vector<16x16xi32>
    %32 = tpu.concatenate %27, %19 in 0 : vector<15x16xi32>, vector<1x16xi32> -> vector<16x16xi32>
    %33 = arith.ori %31, %32 : vector<16x16xi32>
    %34 = arith.ori %30, %33 : vector<16x16xi32>
    %c0_i32_15 = arith.constant 0 : i32
    %35 = vector.broadcast %c0_i32_15 : i32 to vector<16x16xi32>
    %36 = arith.cmpi sgt, %34, %35 : vector<16x16xi32>
    %37 = arith.extui %36 : vector<16x16xi1> to vector<16x16xi32>
    %38 = arith.sitofp %37 : vector<16x16xi32> to vector<16x16xf32>
    %39 = vector.shape_cast %38 : vector<16x16xf32> to vector<1x16x16xf32>
    %40 = tpu.concatenate %6, %39 in 0 : vector<8x16x16xf32>, vector<1x16x16xf32> -> vector<9x16x16xf32>
    %c0_16 = arith.constant 0 : index
    %c0_17 = arith.constant 0 : index
    %c0_18 = arith.constant 0 : index
    %c0_19 = arith.constant 0 : index
    %41 = vector.load %arg3[%c0_16, %c0_17, %c0_18, %c0_19] : memref<1x9x16x16xf32, #tpu.memory_space<vmem>>, vector<1x9x16x16xf32>
    %42 = vector.shape_cast %41 : vector<1x9x16x16xf32> to vector<9x16x16xf32>
    %43 = vector.shape_cast %40 : vector<9x16x16xf32> to vector<1x9x16x16xf32>
    tpu.vector_store %arg3[%c0_16, %c0_17, %c0_18, %c0_19], %43 {strides = array<i32>} : memref<1x9x16x16xf32, #tpu.memory_space<vmem>>, vector<1x9x16x16xf32>,
    return
  }
  func.func @transform_0(%arg0: i32) -> (i32, i32, i32, i32) {
    %c0_i32 = arith.constant 0 : i32
    %c0_i32_0 = arith.constant 0 : i32
    %c0_i32_1 = arith.constant 0 : i32
    %c0_i32_2 = arith.constant 0 : i32
    return %arg0, %c0_i32, %c0_i32_0, %c0_i32_1 : i32, i32, i32, i32
  }
  func.func @transform_1(%arg0: i32) -> (i32, i32, i32, i32) {
    %c0_i32 = arith.constant 0 : i32
    %c0_i32_0 = arith.constant 0 : i32
    %c0_i32_1 = arith.constant 0 : i32
    %c0_i32_2 = arith.constant 0 : i32
    return %arg0, %c0_i32, %c0_i32_0, %c0_i32_1 : i32, i32, i32, i32
  }
  func.func @transform_2(%arg0: i32) -> (i32, i32, i32, i32) {
    %c0_i32 = arith.constant 0 : i32
    %c0_i32_0 = arith.constant 0 : i32
    %c0_i32_1 = arith.constant 0 : i32
    %c0_i32_2 = arith.constant 0 : i32
    return %arg0, %c0_i32, %c0_i32_0, %c0_i32_1 : i32, i32, i32, i32
  }
  func.func @transform_3(%arg0: i32) -> (i32, i32) {
    %c0_i32 = arith.constant 0 : i32
    %c0_i32_0 = arith.constant 0 : i32
    %c0_i32_1 = arith.constant 0 : i32
    return %c0_i32, %c0_i32_0 : i32, i32
  }
}

</mosaic_0001>

<bundles_post_ra>
// kernel: tpu_custom_call.1
= control target key start
LH: loop header
LB: loop body
LE: loop exit
PB: predicated region body
PF: predicated region fallthrough
CT: control target
= control target key end

     0   :  { %9 = vsyncpa [#allocation3], 0  ;;  %s1240_s0 = inlined_call_operand.hbm [shape: s32[2,1,16,16], index: 0, kind: input, shape index: {}]   ;;  %s1241_s1 = inlined_call_operand.hbm [shape: s32[2,1,16,16], index: 1, kind: input, shape index: {}]   ;;  %s1242_s2 = inlined_call_operand.hbm [shape: f32[2,9,16,16], index: 2, kind: output, shape index: {0}]   ;;  %s1243_s3 = inlined_call_operand.vmem [shape: f32[8,1], index: 3, kind: output, shape index: {1}]  }
   0x1   :  { %11 = vsyncpa [#allocation3 + $0x1], 0 }
   0x2   :  { %12 = vsyncpa [#allocation6], 0 }
   0x3   :  { %14 = vsyncpa [#allocation6 + $0x1], 0 }
   0x4   :  { %15 = vsyncpa [#allocation4], 0 }
   0x5   :  { %17 = vsyncpa [#allocation4 + $0x1], 0  ;;  %s887_s12 = smov 0   ;;  %s889_s13 = smov 0  }
   0x6   :  { %s891_s14 = smov 0   ;;  %s893_s15 = smov 0  }
   0x7 LB: > { %s908_s16 = sadd.s32 4294967295, %s853_s15   ;;  %s625_s17 = sadd.s32 4294967294, %s853_s15   ;;  %s853_s15 = sphi %s893_s15, %s1259_s15   ;;  %s849_s14 = sphi %s891_s14, %s1258_s14   ;;  %s845_s13 = sphi %s889_s13, %s1257_s13   ;;  %s841_s12 = sphi %s887_s12, %s1256_s12  }
   0x8   : > { %s912_s18 = sadd.s32 1, %s853_s15   ;;  %s30_s19 = sadd.s32 1, %s849_s14 }
   0x9   : > { %s27_s20 = ssub.s32 %s853_s15, %s912_s18  ;;  %p37_p0 = scmp.ne.s32.totalorder %s849_s14, %s845_s13 }
   0xa   : > { %p28_p1 = scmp.eq.s32.totalorder %s27_s20, 0  ;;  %p38_p2 = scmp.eq.s32.totalorder %s853_s15, 0 }
   0xb   : > { %p43_p3 = scmp.ne.s32.totalorder %s845_s13, %s841_s12  ;;  %p44_p4 = scmp.eq.s32.totalorder %s908_s16, 0 }
   0xc   : > { %s924_s21 = scalar_select %p28_p1, %s849_s14, %s30_s19  }
   0xd   : > { %p926_p5 = por %p38_p2, %p37_p0  ;;  %p930_p6 = por %p44_p4, %p43_p3 }
   0xe   : > { %p93_p7 = scmp.eq.s32.totalorder %s908_s16, 1  ;;  %p99_p8 = scmp.eq.s32.totalorder %s625_s17, 1 }
   0xf   : > { %s1247_s23 = scalar_select %p930_p6, 1, 0 }
  0x10   : > { %p680_p10 = scmp.lt.s32.totalorder %s853_s15, 2  ;;  %p937_p11 = por %p93_p7, %p37_p0 }
  0x11   : > { %p941_p12 = por %p99_p8, %p43_p3  ;;  %s946_s26 = sand.u32 1, %s849_s14  }
  0x12   : > { %s1248_s24 = scalar_select %p937_p11, 1, 0 }
  0x13   : > { %s1249_s25 = scalar_select %p941_p12, 1, 0 }
  0x14   : > { %s659_s27 = sshll.u32 %s853_s15, 8  ;;  %s628_s28 = sshll.u32 %s946_s26, 4 }
  0x15   : > { %s955_s4 = scalar_lea.hbm %s1240_s0, %s659_s27  ;;  %s144_s5 = scalar_lea.vmem [#allocation2], %s628_s28 }
  0x16   : > { %s151_s6 = sshll.u32 %s144_s5, 4  ;;  %p961_p13 = pnand %p680_p10, %p926_p5  ;;  %s965_s6 = int_to_ptr.vmem [resolvable:$true] %s151_s6 }
  0x17   : > { %s141_s8 = scalar_lea.sflag [#allocation3], %s946_s26  ;;  %s723_s9 = scalar_lea.hbm %s955_s4, 256 }
  0x18   : > { %p724_p0 = scmp.ne.s32.totalorder %s955_s4, %s723_s9  ;;  %p725_p1 = pneg %p961_p13 }
  0x19   : > { %s728_s17 = scalar_lea.hbm %s1240_s0, 512  ;;  %p729_p4 = scmp.lt.u32.totalorder %s955_s4, %s1240_s0 }
  0x1a   : > { %p726_p2 = pnand %p725_p1, %p724_p0  ;;  %p730_p5 = scmp.lt.u32.totalorder %s728_s17, %s723_s9 }
  0x1b   : > { %p732_p8 = scmp.lt.u32.totalorder %s723_s9, %s955_s4 }
  0x1c   : > { %p727_p3 = pneg %p726_p2  ;;  %p731_p7 = por %p730_p5, %p729_p4 }
  0x1e   : > { %p733_p10 = por %p732_p8, %p731_p7 }
  0x20   : > { %p734_p9 = pnand %p733_p10, %p727_p3 }
  0x22   : > { %737 = shalt.err (!%p734_p9)
}
  0x23   : > { %s738_s22 = scalar_lea.vmem %s965_s6, 256  ;;  %s855_s29 = smov [#allocation2]  }
  0x24   : > { %p739_p0 = scmp.ne.s32.totalorder %s965_s6, %s738_s22  ;;  %s743_s30 = sshll.u32 %s855_s29, 4  ;;  %s744_s30 = int_to_ptr.vmem [resolvable:$false] %s743_s30 }
  0x25   : > { %s745_s5 = scalar_lea.vmem %s744_s30, 512  ;;  %p746_p11 = scmp.lt.s32.totalorder %s965_s6, %s744_s30 }
  0x26   : > { %p741_p2 = pnand %p739_p0, %p725_p1  ;;  %p747_p4 = scmp.lt.s32.totalorder %s745_s5, %s738_s22 }
  0x28   : > { %p742_p12 = pneg %p741_p2  ;;  %p748_p5 = por %p747_p4, %p746_p11 }
  0x2a   : > { %p749_p7 = pnand %p748_p5, %p742_p12 }
  0x2c   : > { %752 = shalt.err (!%p749_p7)
}
  0x2d   : > { %s856_s9 = smov 128   ;;  %s857_s10 = smov 8  }
  0x2e   : > { %672 = dma.hbm_to_vmem [thread:$0]  (!%p961_p13), %s955_s4, 256, %s965_s6, %s141_s8, %s856_s9, %s856_s9, %s857_s10  }
  0x2f   : > { %p634_p9 = scmp.ge.s32.totalorder %s853_s15, 1  ;;  %p180_p11 = scmp.lt.s32.totalorder %s853_s15, 3 }
  0x30   : > { %s1009_s20 = scalar_lea.hbm %s1241_s1, %s659_s27  ;;  %s165_s22 = scalar_lea.vmem [#allocation5], %s628_s28 }
  0x31   : > { %p1000_p12 = pnand %p634_p9, %p180_p11  ;;  %s172_s29 = sshll.u32 %s165_s22, 4  ;;  %s1013_s29 = int_to_ptr.vmem [resolvable:$true] %s172_s29 }
  0x32   : > { %s162_s4 = scalar_lea.sflag [#allocation6], %s946_s26  ;;  %s753_s6 = scalar_lea.hbm %s1009_s20, 256 }
  0x33   : > { %p754_p3 = scmp.ne.s32.totalorder %s1009_s20, %s753_s6  ;;  %s758_s27 = scalar_lea.hbm %s1241_s1, 512 }
  0x34   : > { %p759_p0 = scmp.lt.u32.totalorder %s1009_s20, %s1241_s1  ;;  %p760_p2 = scmp.lt.u32.totalorder %s758_s27, %s753_s6 }
  0x35   : > { %p756_p8 = pnand %p754_p3, %p725_p1  ;;  %p762_p5 = scmp.lt.u32.totalorder %s753_s6, %s1009_s20 }
  0x36   : > { %p761_p4 = por %p760_p2, %p759_p0 }
  0x37   : > { %p757_p10 = pneg %p756_p8 }
  0x38   : > { %p763_p7 = por %p762_p5, %p761_p4 }
  0x3a   : > { %p764_p9 = pnand %p763_p7, %p757_p10 }
  0x3c   : > { %767 = shalt.err (!%p764_p9)
}
  0x3d   : > { %s768_s28 = scalar_lea.vmem %s1013_s29, 256  ;;  %s858_s19 = smov [#allocation5]  }
  0x3e   : > { %p769_p11 = scmp.ne.s32.totalorder %s1013_s29, %s768_s28  ;;  %s773_s22 = sshll.u32 %s858_s19, 4  ;;  %s774_s22 = int_to_ptr.vmem [resolvable:$false] %s773_s22 }
  0x3f   : > { %s775_s8 = scalar_lea.vmem %s774_s22, 512  ;;  %p776_p6 = scmp.lt.s32.totalorder %s1013_s29, %s774_s22 }
  0x40   : > { %p771_p3 = pnand %p769_p11, %p725_p1  ;;  %p777_p0 = scmp.lt.s32.totalorder %s775_s8, %s768_s28 }
  0x42   : > { %p772_p8 = pneg %p771_p3  ;;  %p778_p2 = por %p777_p0, %p776_p6 }
  0x44   : > { %p779_p4 = pnand %p778_p2, %p772_p8 }
  0x46   : > { %782 = shalt.err (!%p779_p4)
}
  0x47   : > { %675 = dma.hbm_to_vmem [thread:$0]  (!%p961_p13), %s1009_s20, 256, %s1013_s29, %s162_s4, %s856_s9, %s856_s9, %s857_s10  }
  0x48   : > { %184 = sbr.rel (%p1000_p12) target bundleno = 415 (0x19f), region = 28  ;;  %s1047_s6 = sand.u32 (!%p1000_p12), 1, %s845_s13  }
  0x49   : > { %s635_s30 = sshll.u32 (!%p1000_p12), %s1047_s6, 4  ;;  %s187_s27 = scalar_lea.sflag (!%p1000_p12), [#allocation3], %s1047_s6 }
  0x4a   : > { %s190_s7 = scalar_lea.vmem (!%p1000_p12), [#allocation2], %s635_s30  ;;  %p1252_p6 = scmp.ne.s32.totalorder (!%p1000_p12), %s1247_s23, 0 }
  0x4f   : > { %828 = dma.done.wait (%p1252_p6), %s187_s27, 256  }
  0x50   : > { %830 = vsyncadd (%p1252_p6), %s187_s27, 4294967040  ;;  %s196_s26 = scalar_lea.sflag [#allocation6], %s1047_s6  ;;  %s1056_s9 = scalar_lea.vmem [#allocation5], %s635_s30 }
  0x51   : > { %832 = dma.done.wait (%p1252_p6), %s196_s26, 256  }
  0x52   : > { %834 = vsyncadd (%p1252_p6), %s196_s26, 4294967040  ;;  %s661_s10 = smul.u32 144, %s1047_s6  ;;  %v227_v0 = vld [vmem:[%s190_s7] sm:$0xff]  ;;  %v228_v1 = vld [vmem:[%s190_s7 + $0x8] sm:$0xff]  ;;  %v859_v2 = vmov 0.0   ;;  %p653_p13 = scmp.ne.s32.totalorder %s908_s16, 0 }
  0x53   : > { %vm229_vm0 = vcmp.eq.s32.totalorder %v227_v0, 0  ;;  %vm230_vm1 = vcmp.eq.s32.totalorder %v228_v1, 0  ;;  %vm231_vm2 = vcmp.eq.s32.totalorder %v227_v0, 1  ;;  %vm232_vm3 = vcmp.eq.s32.totalorder %v228_v1, 1 }
  0x54   : > { %vm233_vm4 = vcmp.eq.s32.totalorder %v227_v0, 2  ;;  %vm234_vm5 = vcmp.eq.s32.totalorder %v228_v1, 2  ;;  %vm235_vm6 = vcmp.eq.s32.totalorder %v227_v0, 3  ;;  %vm236_vm7 = vcmp.eq.s32.totalorder %v228_v1, 3  ;;  %s1097_s23 = scalar_lea.vmem [#allocation7], %s661_s10  ;;  %280 = sbr.rel (%p653_p13) target bundleno = 93 (0x5d), region = 40 }
  0x55   : > { %vm237_vm8 = vcmp.eq.s32.totalorder %v227_v0, 4  ;;  %vm238_vm9 = vcmp.eq.s32.totalorder %v228_v1, 4  ;;  %vm239_vm10 = vcmp.eq.s32.totalorder %v227_v0, 5  ;;  %vm240_vm11 = vcmp.eq.s32.totalorder %v228_v1, 5 }
  0x56   : > { %vm241_vm12 = vcmp.eq.s32.totalorder %v227_v0, 6  ;;  %vm242_vm13 = vcmp.eq.s32.totalorder %v228_v1, 6  ;;  %vm243_vm14 = vcmp.eq.s32.totalorder %v227_v0, 7  ;;  %vm244_vm15 = vcmp.eq.s32.totalorder %v228_v1, 7 }
  0x57   : > { %v637_v3 = vsel %vm229_vm0, 1.0, %v859_v2  ;;  %v638_v4 = vsel %vm230_vm1, 1.0, %v859_v2  ;;  %v639_v5 = vsel %vm231_vm2, 1.0, %v859_v2  ;;  %v640_v6 = vsel %vm232_vm3, 1.0, %v859_v2 }
  0x58   : > { %v641_v7 = vsel %vm233_vm4, 1.0, %v859_v2  ;;  %v642_v8 = vsel %vm234_vm5, 1.0, %v859_v2  ;;  %v643_v9 = vsel %vm235_vm6, 1.0, %v859_v2  ;;  %v644_v10 = vsel %vm236_vm7, 1.0, %v859_v2 }
  0x59   : > { %v645_v11 = vsel %vm237_vm8, 1.0, %v859_v2  ;;  %v646_v12 = vsel %vm238_vm9, 1.0, %v859_v2  ;;  %v647_v13 = vsel %vm239_vm10, 1.0, %v859_v2  ;;  %v648_v14 = vsel %vm240_vm11, 1.0, %v859_v2 }
  0x5a   : > { %v649_v15 = vsel %vm241_vm12, 1.0, %v859_v2  ;;  %v650_v16 = vsel %vm242_vm13, 1.0, %v859_v2  ;;  %v651_v17 = vsel %vm243_vm14, 1.0, %v859_v2  ;;  %v652_v18 = vsel %vm244_vm15, 1.0, %v859_v2 }
  0x5b   : > { %vm281_vm0 = vcmask 7168   ;;  %v860_v19 = vmov 0.0  }
  0x5c   : > { %282 = vst.msk [vmem:[%s1243_s3] sm:$0xff] %vm281_vm0, %v860_v19 }
  0x5d PF: > { %vm284_vm1 = vcmask 130048   ;;  %v1152_v36 = vld [vmem:[%s1056_s9 + $0x8] sm:$0xff]  ;;  %s861_s29 = smov 1   ;;  %v1156_v37 = vld [vmem:[%s1056_s9] sm:$0xff]  ;;  %v349_v42 = vlaneseq  ;;  %vm360_vm2 = vcmask 130112   ;;  %vm425_vm3 = vcmask 1041409  }
  0x5e   : > { %v291_v20 = vsel %vm284_vm1, %v639_v5, 0.0  ;;  %491 = vst.msk [vmem:[%s1097_s23] sm:$0xff] %vm284_vm1, %v637_v3  ;;  %492 = vst.msk [vmem:[%s1097_s23 + $0x8] sm:$0xff] %vm284_vm1, %v638_v4  ;;  %v285_v21 = vsel %vm284_vm1, %v637_v3, 0.0  ;;  %v294_v22 = vsel %vm284_vm1, %v640_v6, 0.0  ;;  %v288_v23 = vsel %vm284_vm1, %v638_v4, 0.0 }
  0x5f   : > { %493 = vst.msk [vmem:[%s1097_s23 + $0x10] sm:$0xff] %vm284_vm1, %v639_v5  ;;  %494 = vst.msk [vmem:[%s1097_s23 + $0x18] sm:$0xff] %vm284_vm1, %v640_v6  ;;  %292 = vadd.xlane.f32.xlu1 %v291_v20  ;;  %286 = vadd.xlane.f32.xlu0 %v285_v21  ;;  %v300_v24 = vsel %vm284_vm1, %v642_v8, 0.0  ;;  %v297_v25 = vsel %vm284_vm1, %v641_v7, 0.0  ;;  %v306_v26 = vsel %vm284_vm1, %v644_v10, 0.0  ;;  %v303_v27 = vsel %vm284_vm1, %v643_v9, 0.0 }
  0x60   : > { %495 = vst.msk [vmem:[%s1097_s23 + $0x20] sm:$0xff] %vm284_vm1, %v641_v7  ;;  %496 = vst.msk [vmem:[%s1097_s23 + $0x28] sm:$0xff] %vm284_vm1, %v642_v8  ;;  %v312_v28 = vsel %vm284_vm1, %v646_v12, 0.0  ;;  %v309_v29 = vsel %vm284_vm1, %v645_v11, 0.0  ;;  %v318_v30 = vsel %vm284_vm1, %v648_v14, 0.0  ;;  %v315_v31 = vsel %vm284_vm1, %v647_v13, 0.0 }
  0x61   : > { %497 = vst.msk [vmem:[%s1097_s23 + $0x30] sm:$0xff] %vm284_vm1, %v643_v9  ;;  %498 = vst.msk [vmem:[%s1097_s23 + $0x38] sm:$0xff] %vm284_vm1, %v644_v10  ;;  %v324_v32 = vsel %vm284_vm1, %v650_v16, 0.0  ;;  %v321_v33 = vsel %vm284_vm1, %v649_v15, 0.0  ;;  %v330_v34 = vsel %vm284_vm1, %v652_v18, 0.0  ;;  %v327_v35 = vsel %vm284_vm1, %v651_v17, 0.0 }
  0x62   : > { %499 = vst.msk [vmem:[%s1097_s23 + $0x40] sm:$0xff] %vm284_vm1, %v645_v11  ;;  %500 = vst.msk [vmem:[%s1097_s23 + $0x48] sm:$0xff] %vm284_vm1, %v646_v12  ;;  %v350_v45 = vand.u32 127, %v349_v42  ;;  %v352_v49 = vshrl.u32 %v349_v42, 7  ;;  %vm427_vm4 = vcmask 1042434   ;;  %vm429_vm5 = vcmask 1043459  }
  0x63   : > { %501 = vst.msk [vmem:[%s1097_s23 + $0x50] sm:$0xff] %vm284_vm1, %v647_v13  ;;  %502 = vst.msk [vmem:[%s1097_s23 + $0x58] sm:$0xff] %vm284_vm1, %v648_v14  ;;  %295 = vadd.xlane.f32.xlu1 %v294_v22  ;;  %289 = vadd.xlane.f32.xlu0 %v288_v23  ;;  %vm431_vm6 = vcmask 1044484   ;;  %vm433_vm7 = vcmask 1045509   ;;  %vm435_vm8 = vcmask 1046534   ;;  %vm437_vm9 = vcmask 1047559  }
  0x64   : > { %503 = vst.msk [vmem:[%s1097_s23 + $0x60] sm:$0xff] %vm284_vm1, %v649_v15  ;;  %504 = vst.msk [vmem:[%s1097_s23 + $0x68] sm:$0xff] %vm284_vm1, %v650_v16  ;;  %v355_v46 = vadd.s32 4294967288, %v350_v45  ;;  %v353_v53 = vsub.s32 %v350_v45, %v352_v49  ;;  %s863_s4 = smov 127   ;;  %vm456_vm12 = vcmask 1040384   ;;  %vm476_vm15 = vcmask 1046528  }
  0x65   : > { %505 = vst.msk [vmem:[%s1097_s23 + $0x70] sm:$0xff] %vm284_vm1, %v651_v17  ;;  %506 = vst.msk [vmem:[%s1097_s23 + $0x78] sm:$0xff] %vm284_vm1, %v652_v18  ;;  %vm444_vm0 = vcmask 7168   ;;  %s662_s5 = smul.u32 2304, %s908_s16  ;;  %s523_s17 = sshll.u32 %s1097_s23, 4  ;;  %s1186_s17 = int_to_ptr.vmem [resolvable:$true] %s523_s17 }
  0x66   : > { %v358_v50 = vsub.s32 %v355_v46, %v352_v49  ;;  %s510_s16 = scalar_lea.sflag [#allocation4], %s1047_s6  ;;  %s783_s8 = scalar_lea.vmem %s1186_s17, 2304 }
  0x67   : > { %301 = vadd.xlane.f32.xlu1 %v300_v24  ;;  %298 = vadd.xlane.f32.xlu0 %v297_v25  ;;  %s1184_s22 = scalar_lea.hbm %s1242_s2, %s662_s5  ;;  %p784_p1 = scmp.ne.s32.totalorder %s1186_s17, %s783_s8 }
  0x68   : > { %p1253_p12 = scmp.ne.s32.totalorder %s1248_s24, 0  ;;  %s864_s30 = smov [#allocation7]  }
  0x69   : > { %s787_s27 = sshll.u32 %s864_s30, 4  ;;  %s788_s27 = int_to_ptr.vmem [resolvable:$false] %s787_s27 }
  0x6a   : > { %p785_p10 = pnand %p784_p1, %p1253_p12  ;;  %s789_s7 = scalar_lea.vmem %s788_s27, 4608 }
  0x6b   : > { %307 = vadd.xlane.f32.xlu1 %v306_v26  ;;  %304 = vadd.xlane.f32.xlu0 %v303_v27  ;;  %p790_p7 = scmp.lt.s32.totalorder %s1186_s17, %s788_s27  ;;  %p791_p9 = scmp.lt.s32.totalorder %s789_s7, %s783_s8 }
  0x6c   : > { %p786_p5 = pneg %p785_p10 }
  0x6d   : > { %p792_p11 = por %p791_p9, %p790_p7 }
  0x6f   : > { %313 = vadd.xlane.f32.xlu1 %v312_v28  ;;  %310 = vadd.xlane.f32.xlu0 %v309_v29  ;;  %p793_p3 = pnand %p792_p11, %p786_p5 }
  0x73   : > { %319 = vadd.xlane.f32.xlu1 %v318_v30  ;;  %316 = vadd.xlane.f32.xlu0 %v315_v31  ;;  %v862_v31 = vmov 0  }
  0x77   : > { %325 = vadd.xlane.f32.xlu1 %v324_v32  ;;  %322 = vadd.xlane.f32.xlu0 %v321_v33 }
  0x7b   : > { %331 = vadd.xlane.f32.xlu1 %v330_v34  ;;  %328 = vadd.xlane.f32.xlu0 %v327_v35  ;;  %v457_v34 = vrot.slane %v1156_v37, 7  ;;  %v458_v35 = vrot.slane %v1152_v36, 7 }
  0x7d   : > { %vm460_vm13 = vcmp.ne.s32.totalorder %v1156_v37, %v457_v34 }
  0x8c   : > { %450 = vrot.lane.b32.xlu1 %v1152_v36, %s861_s29 }
  0x91   : > { %448 = vrot.lane.b32.xlu0 %v1156_v37, %s861_s29 }
  0xec   : > { %v293_v38 = vpop.xlane.xlu1 %292  ;;  %v287_v39 = vpop.xlane.xlu0 %286 }
  0xed   : > { %v365_v60 = vrot.slane %v293_v38, %v353_v53  ;;  %v354_v61 = vrot.slane %v287_v39, %v353_v53  ;;  %v459_v38 = vsel %vm456_vm12, %v457_v34, %v458_v35 }
  0xee   : > { %vm461_vm14 = vcmp.ne.s32.totalorder %v1152_v36, %v459_v38 }
  0xef   : > { %v463_v39 = vsel %vm461_vm14, 1, %v862_v31 }
  0xf0   : > { %v296_v40 = vpop.xlane.xlu1 %295  ;;  %v290_v41 = vpop.xlane.xlu0 %289 }
  0xf1   : > { %v369_v54 = vrot.slane %v296_v40, %v358_v50  ;;  %v359_v55 = vrot.slane %v290_v41, %v358_v50  ;;  %v462_v40 = vsel %vm460_vm13, 1, %v862_v31  ;;  %v478_v41 = vrot.slane %v463_v39, 1 }
  0xf2   : > { %v477_v42 = vrot.slane %v462_v40, 1 }
  0xf3   : > { %v370_v3 = vsel %vm360_vm2, %v369_v54, %v365_v60  ;;  %v361_v4 = vsel %vm360_vm2, %v359_v55, %v354_v61 }
  0xf4   : > { %v302_v43 = vpop.xlane.xlu1 %301  ;;  %v299_v44 = vpop.xlane.xlu0 %298  ;;  %v426_v13 = vsel %vm425_vm3, %v370_v3, %v361_v4 }
  0xf5   : > { %v378_v56 = vrot.slane %v302_v43, %v358_v50  ;;  %v374_v57 = vrot.slane %v299_v44, %v353_v53  ;;  %v475_v43 = vsel %vm456_vm12, 0, %v462_v40  ;;  %v479_v44 = vsel %vm476_vm15, %v477_v42, %v478_v41 }
  0xf6   : > { %v481_v45 = vor.u32 %v479_v44, %v475_v43 }
  0xf7   : > { %v379_v7 = vsel %vm360_vm2, %v378_v56, %v374_v57 }
  0xf8   : > { %v308_v47 = vpop.xlane.xlu1 %307  ;;  %v305_v48 = vpop.xlane.xlu0 %304  ;;  %v428_v15 = vsel %vm427_vm4, %v379_v7, %v426_v13 }
  0xf9   : > { %v387_v62 = vrot.slane %v308_v47, %v358_v50  ;;  %v383_v63 = vrot.slane %v305_v48, %v353_v53 }
  0xfb   : > { %v388_v10 = vsel %vm360_vm2, %v387_v62, %v383_v63 }
  0xfc   : > { %v314_v51 = vpop.xlane.xlu1 %313  ;;  %v311_v52 = vpop.xlane.xlu0 %310  ;;  %v430_v17 = vsel %vm429_vm5, %v388_v10, %v428_v15 }
  0xfd   : > { %v396_v0 = vrot.slane %v314_v51, %v358_v50  ;;  %v392_v1 = vrot.slane %v311_v52, %v353_v53 }
  0xff   : > { %v397_v14 = vsel %vm360_vm2, %v396_v0, %v392_v1 }
 0x100   : > { %v320_v58 = vpop.xlane.xlu1 %319  ;;  %v317_v59 = vpop.xlane.xlu0 %316  ;;  %v432_v21 = vsel %vm431_vm6, %v397_v14, %v430_v17 }
 0x101   : > { %v405_v5 = vrot.slane %v320_v58, %v358_v50  ;;  %v401_v6 = vrot.slane %v317_v59, %v353_v53 }
 0x103   : > { %v406_v16 = vsel %vm360_vm2, %v405_v5, %v401_v6 }
 0x104   : > { %v326_v8 = vpop.xlane.xlu1 %325  ;;  %v323_v9 = vpop.xlane.xlu0 %322  ;;  %v434_v24 = vsel %vm433_vm7, %v406_v16, %v432_v21 }
 0x105   : > { %v414_v11 = vrot.slane %v326_v8, %v358_v50  ;;  %v410_v12 = vrot.slane %v323_v9, %v353_v53 }
 0x107   : > { %v415_v18 = vsel %vm360_vm2, %v414_v11, %v410_v12 }
 0x108   : > { %v332_v19 = vpop.xlane.xlu1 %331  ;;  %v329_v20 = vpop.xlane.xlu0 %328  ;;  %v436_v26 = vsel %vm435_vm8, %v415_v18, %v434_v24 }
 0x109   : > { %v423_v22 = vrot.slane %v332_v19, %v358_v50  ;;  %v419_v23 = vrot.slane %v329_v20, %v353_v53 }
 0x10b   : > { %v424_v25 = vsel %vm360_vm2, %v423_v22, %v419_v23  ;;  %vm470_vm2 = vcmask 121856  }
 0x10c   : > { %v449_v27 = vpop.permute.xlu0 %448  ;;  %v438_v28 = vsel %vm437_vm9, %v424_v25, %v436_v26  ;;  %v451_v29 = vpop.permute.xlu1 %450 }
 0x10d   : > { %vm452_vm10 = vcmp.ne.s32.totalorder %v1156_v37, %v449_v27  ;;  %v440_v30 = vsel %vm284_vm1, %v438_v28, 0.0  ;;  %vm453_vm11 = vcmp.ne.s32.totalorder %v1152_v36, %v451_v29  ;;  %v480_v37 = vsel %vm476_vm15, %v478_v41, 0 }
 0x10e   : > { %v454_v32 = vsel %vm452_vm10, 1, %v862_v31  ;;  %441 = vadd.xlane.f32.xlu1 %v440_v30  ;;  %v455_v33 = vsel %vm453_vm11, 1, %v862_v31  ;;  %v482_v50 = vor.u32 %v480_v37, %v463_v39 }
 0x10f   : > { %466 = vrot.lane.b32.xlu0 %v454_v32, %s863_s4  ;;  %v464_v47 = vsel %vm444_vm0, 0, %v454_v32  ;;  %v465_v52 = vsel %vm444_vm0, 0, %v455_v33 }
 0x113   : > { %468 = vrot.lane.b32.xlu0 %v455_v33, %s863_s4 }
 0x181   : > { %v467_v46 = vpop.permute.xlu0 %466 }
 0x182   : > { %v471_v48 = vsel %vm470_vm2, %v467_v46, 0 }
 0x183   : > { %v473_v49 = vor.u32 %v471_v48, %v464_v47 }
 0x185   : > { %v483_v36 = vor.u32 %v481_v45, %v473_v49  ;;  %v469_v51 = vpop.permute.xlu0 %468 }
 0x186   : > { %v472_v53 = vsel %vm470_vm2, %v469_v51, 0 }
 0x187   : > { %vm485_vm3 = vcmp.gt.s32.totalorder %v483_v36, 0  ;;  %v474_v54 = vor.u32 %v472_v53, %v465_v52 }
 0x188   : > { %v654_v55 = vsel %vm485_vm3, 1.0, %v859_v2 }
 0x189   : > { %507 = vst.msk [vmem:[%s1097_s23 + $0x80] sm:$0xff] %vm284_vm1, %v654_v55  ;;  %v484_v56 = vor.u32 %v482_v50, %v474_v54 }
 0x18b   : > { %vm486_vm4 = vcmp.gt.s32.totalorder %v484_v56, 0 }
 0x18c   : > { %v655_v57 = vsel %vm486_vm4, 1.0, %v859_v2 }
 0x18d   : > { %508 = vst.msk [vmem:[%s1097_s23 + $0x88] sm:$0xff] %vm284_vm1, %v655_v57 }
 0x18e   : > { %796 = shalt.err (!%p793_p3)
}
 0x18f   : > { %s797_s26 = scalar_lea.hbm %s1184_s22, 2304  ;;  %s801_s23 = scalar_lea.hbm %s1242_s2, 4608 }
 0x190   : > { %p798_p8 = scmp.ne.s32.totalorder %s1184_s22, %s797_s26  ;;  %p802_p4 = scmp.lt.u32.totalorder %s1184_s22, %s1242_s2 }
 0x191   : > { %p803_p6 = scmp.lt.u32.totalorder %s801_s23, %s797_s26  ;;  %p805_p1 = scmp.lt.u32.totalorder %s797_s26, %s1184_s22 }
 0x192   : > { %p799_p0 = pnand %p798_p8, %p1253_p12 }
 0x193   : > { %p804_p13 = por %p803_p6, %p802_p4 }
 0x194   : > { %p800_p2 = pneg %p799_p0 }
 0x195   : > { %p806_p10 = por %p805_p1, %p804_p13 }
 0x197   : > { %p807_p5 = pnand %p806_p10, %p800_p2 }
 0x199   : > { %810 = shalt.err (!%p807_p5)
}
 0x19a   : > { %s865_s29 = smov 128   ;;  %s866_s4 = smov 8   ;;  %v283_v2 = vld [vmem:[%s1243_s3] sm:$0xff] }
 0x19b   : > { %667 = dma.vmem_to_hbm [thread:$0]  (%p1253_p12), %s1186_s17, 2304, %s1184_s22, %s510_s16, %s865_s29, %s865_s29, %s866_s4   ;;  %v442_v58 = vpop.xlane.xlu1 %441 }
 0x19c   : > { %v443_v59 = vadd.f32 %v442_v58, %v283_v2 }
 0x19e   : > { %445 = vst.msk [vmem:[%s1243_s3] sm:$0xff] %vm444_vm0, %v443_v59 }
 0x19f PF: > { %s544_s30 = sand.u32 1, %s841_s12   ;;  %p1254_p7 = scmp.ne.s32.totalorder %s1249_s25, 0 }
 0x1a0   : > { %p1255_p9 = scmp.ge.s32.totalorder %s853_s15, 2  ;;  %s545_s24 = scalar_lea.sflag [#allocation4], %s544_s30 }
 0x1a2   : > { %p677_p11 = pnand %p1255_p9, %p1254_p7 }
 0x1a4   : > { %836 = dma.done.wait (!%p677_p11), %s545_s24, 2304  }
 0x1a5   : > { %838 = vsyncadd (!%p677_p11), %s545_s24, 4294964992  ;;  %p20_p12 = scmp.ge.s32.totalorder %s912_s18, 4   ;;  %s1256_s12 = smov %s845_s13 }
 0x1a6   : > { %s1257_s13 = smov %s849_s14  ;;  %s1258_s14 = smov %s924_s21 }
 0x1a7   : > { %s1259_s15 = smov %s912_s18  ;;  %22 = sbr.rel (!%p20_p12) target bundleno = 7 (0x7), region = 98 }
 0x1ae   :  { %550 = vsyncpa [#allocation3], 1 }
 0x1af   :  { %552 = vsyncpa [#allocation3 + $0x1], 1 }
 0x1b0   :  { %553 = vsyncpa [#allocation6], 1 }
 0x1b1   :  { %555 = vsyncpa [#allocation6 + $0x1], 1 }
 0x1b2   :  { %556 = vsyncpa [#allocation4], 1 }
 0x1b3   :  { %558 = vsyncpa [#allocation4 + $0x1], 1 }

</bundles_post_ra>
